<compile_context>
chip_gen: v7x
topology: tpu7x:2x2x1
jax: 0.10.0
libtpu: 0.0.40
codegen_flags: <defaults>
</compile_context>

<pallas_src>
import jax
import jax.numpy as jnp
from jax.experimental import pallas as pl
from jax.experimental.pallas import tpu as pltpu


def _make_reflect_bottom_kernel(H, W, pad):
    """Kernel over x2d (B, H*W) -> out2d (B, (H+pad)*W); lanes = flattened (h, w)."""

    def kernel(x_ref, o_ref):
        x = x_ref[...]                                   # (B, H*W), a few vregs
        # Bottom reflection rows: out row (H + j) <- in row (H - 2 - j).
        refl = [x[:, (H - 2 - j) * W:(H - 1 - j) * W] for j in range(pad)]
        # Build the whole output tile in registers, ONE full-width store.
        o_ref[...] = jnp.concatenate([x, *refl], axis=1)

    return kernel


def reflection_pad3d_bottom(x, pad=5):
    """aten.reflection_pad3d(x, (0, 0, 0, pad, 0, 0)) for x of shape (N, C, D, H, W)."""
    N, C, D, H, W = x.shape
    assert 0 < pad <= H - 1, "reflection pad must satisfy pad <= H - 1"
    H_out = H + pad
    B = N * C * D

    # Free reshape: (N, C, D, H, W) is contiguous row-major, so collapsing the
    # leading dims to B and trailing (H, W) to H*W is a bitcast (no HBM copy).
    x2d = x.reshape(B, H * W)

    itemsize = jnp.dtype(x.dtype).itemsize
    bytes_accessed = B * H * W * itemsize + B * H_out * W * itemsize

    out2d = pl.pallas_call(
        _make_reflect_bottom_kernel(H, W, pad),
        out_shape=jax.ShapeDtypeStruct((B, H_out * W), x.dtype),
        in_specs=[pl.BlockSpec(memory_space=pltpu.MemorySpace.VMEM)],
        out_specs=pl.BlockSpec(memory_space=pltpu.MemorySpace.VMEM),
        cost_estimate=pl.CostEstimate(
            flops=0, transcendentals=0, bytes_accessed=bytes_accessed),
    )(x2d)

    return out2d.reshape(N, C, D, H_out, W)


if __name__ == "__main__":
    key = jax.random.PRNGKey(0)
    # Module's annotated input shape: [2, 3, 10, 10, 6], float32.
    x = jax.random.normal(key, (2, 3, 10, 10, 6), dtype=jnp.float32)

    out = reflection_pad3d_bottom(x, pad=5)
    out = jax.block_until_ready(out)

    # Reference: jnp.pad 'reflect' (edge-exclusive) matches aten.reflection_pad3d.
    ref = jnp.pad(x, ((0, 0), (0, 0), (0, 0), (0, 5), (0, 0)), mode="reflect")
    assert out.shape == (2, 3, 10, 15, 6), out.shape
    assert out.dtype == jnp.float32
    assert bool(jnp.array_equal(out, ref)), "mismatch vs reference reflection pad3d"

    print("KERNEL_OK")
</pallas_src>

<mosaic_0001>
module attributes {stable_mosaic.version = 11 : i64} {
  func.func @kernel(%arg0: memref<60x60xf32, #tpu.memory_space<vmem>>, %arg1: memref<60x90xf32, #tpu.memory_space<vmem>>) attributes {dimension_semantics = [], scalar_prefetch = 0 : i64, scratch_operands = 0 : i64, tpu.core_type = #tpu.core_type<tc>} {
    %c0 = arith.constant 0 : index
    %c0_0 = arith.constant 0 : index
    %0 = vector.load %arg0[%c0, %c0_0] : memref<60x60xf32, #tpu.memory_space<vmem>>, vector<60x60xf32>
    %1 = vector.extract_strided_slice %0 {offsets = [0, 48], sizes = [60, 6], strides = [1, 1]} : vector<60x60xf32> to vector<60x6xf32>
    %2 = vector.extract_strided_slice %0 {offsets = [0, 42], sizes = [60, 6], strides = [1, 1]} : vector<60x60xf32> to vector<60x6xf32>
    %3 = vector.extract_strided_slice %0 {offsets = [0, 36], sizes = [60, 6], strides = [1, 1]} : vector<60x60xf32> to vector<60x6xf32>
    %4 = vector.extract_strided_slice %0 {offsets = [0, 30], sizes = [60, 6], strides = [1, 1]} : vector<60x60xf32> to vector<60x6xf32>
    %5 = vector.extract_strided_slice %0 {offsets = [0, 24], sizes = [60, 6], strides = [1, 1]} : vector<60x60xf32> to vector<60x6xf32>
    %6 = tpu.concatenate %0, %1, %2, %3, %4, %5 in 1 : vector<60x60xf32>, vector<60x6xf32>, vector<60x6xf32>, vector<60x6xf32>, vector<60x6xf32>, vector<60x6xf32> -> vector<60x90xf32>
    %c0_1 = arith.constant 0 : index
    %c0_2 = arith.constant 0 : index
    %7 = vector.load %arg1[%c0_1, %c0_2] : memref<60x90xf32, #tpu.memory_space<vmem>>, vector<60x90xf32>
    tpu.vector_store %arg1[%c0_1, %c0_2], %6 {strides = array<i32>} : memref<60x90xf32, #tpu.memory_space<vmem>>, vector<60x90xf32>,
    return
  }
}

</mosaic_0001>

<bundles_post_ra>
// kernel: tpu_custom_call.1
= control target key start
LH: loop header
LB: loop body
LE: loop exit
PB: predicated region body
PF: predicated region fallthrough
CT: control target
= control target key end

     0   :  { %6 = vsyncpa [#allocation3], 0  ;;  %s466_s0 = inlined_call_operand.hbm [shape: f32[60,60], index: 0, kind: input, shape index: {}]   ;;  %s467_s1 = inlined_call_operand.hbm [shape: f32[60,90], index: 1, kind: output, shape index: {}]  }
   0x1   :  { %7 = vsyncpa [#allocation4], 0  ;;  %s288_s6 = smov [#allocation2]   ;;  %s240_s10 = scalar_lea.hbm %s466_s0, 1024 }
   0x2   :  { %s13_s7 = sshll.u32 %s288_s6, 4  ;;  %p241_p0 = scmp.ne.s32.totalorder %s466_s0, %s240_s10  ;;  %s14_s7 = int_to_ptr.vmem [resolvable:$true] %s13_s7 }
   0x3   :  { %p244_p1 = scmp.lt.u32.totalorder %s240_s10, %s466_s0 }
   0x5   :  { %p246_p2 = pnand %p244_p1, %p241_p0 }
   0x7   :  { %249 = shalt.err (!%p246_p2)
}
   0x8   :  { %s250_s15 = scalar_lea.vmem %s14_s7, 1024  ;;  %p255_p4 = scmp.lt.s32.totalorder %s14_s7, %s14_s7 }
   0x9   :  { %p251_p3 = scmp.ne.s32.totalorder %s14_s7, %s250_s15  ;;  %p256_p5 = scmp.lt.s32.totalorder %s250_s15, %s250_s15 }
   0xb   :  { %p257_p6 = por %p256_p5, %p255_p4 }
   0xd   :  { %p258_p7 = pnand %p257_p6, %p251_p3 }
   0xf   :  { %261 = shalt.err (!%p258_p7)
}
  0x10   :  { %s289_s16 = smov 128   ;;  %s290_s17 = smov 8  }
  0x11   :  { %19 = dma.hbm_to_vmem [thread:$0]  %s466_s0, 1024, %s14_s7, [#allocation3], %s289_s16, %s289_s16, %s290_s17  }
  0x12   :  { %284 = dma.done.wait [#allocation3], 1024  }
  0x13   :  { %285 = vsyncadd [#allocation3], 4294966272  ;;  %v322_v0 = vld [vmem:[#allocation2 + $0x10] sm:$0xff]  ;;  %v324_v1 = vld [vmem:[#allocation2] sm:$0xff]  ;;  %s291_s20 = smov 12   ;;  %s292_s0 = smov 24  }
  0x14   :  { %43 = vrot.lane.b32.xlu1 %v322_v0, %s291_s20  ;;  %39 = vrot.lane.b32.xlu0 %v324_v1, %s291_s20  ;;  %v328_v2 = vld [vmem:[#allocation2 + $0x18] sm:$0xff]  ;;  %v330_v3 = vld [vmem:[#allocation2 + $0x8] sm:$0xff]  ;;  %v336_v5 = vld [vmem:[#allocation2 + $0x20] sm:$0xff]  ;;  %s293_s21 = smov 36   ;;  %s294_s22 = smov 48   ;;  %vm159_vm0 = vcmask 490496  }
  0x15   :  { %v334_v4 = vld [vmem:[#allocation2 + $0x28] sm:$0xff]  ;;  %v340_v6 = vld [vmem:[#allocation2 + $0x38] sm:$0xf]  ;;  %v342_v7 = vld [vmem:[#allocation2 + $0x30] sm:$0xff]  ;;  %s295_s23 = smov 60   ;;  %vm168_vm1 = vcmask 539648  }
  0x16   :  { %vm177_vm2 = vcmask 588800   ;;  %vm186_vm3 = vcmask 637952   ;;  %vm195_vm4 = vcmask 687104   ;;  %vm204_vm5 = vcmask 736256   ;;  %s296_s24 = smov [#allocation5]  }
  0x17   :  { %s219_s25 = sshll.u32 %s296_s24, 4  ;;  %vm212_vm6 = vcmask 732160   ;;  %s220_s25 = int_to_ptr.vmem [resolvable:$true] %s219_s25 }
  0x18   :  { %45 = vrot.lane.b32.xlu1 %v328_v2, %s291_s20  ;;  %41 = vrot.lane.b32.xlu0 %v330_v3, %s291_s20  ;;  %s262_s26 = scalar_lea.vmem %s220_s25, 1024  ;;  %p267_p9 = scmp.lt.s32.totalorder %s220_s25, %s220_s25 }
  0x19   :  { %p263_p8 = scmp.ne.s32.totalorder %s220_s25, %s262_s26  ;;  %p268_p10 = scmp.lt.s32.totalorder %s262_s26, %s262_s26 }
  0x1b   :  { %p269_p11 = por %p268_p10, %p267_p9 }
  0x1c   :  { %49 = vrot.lane.b32.xlu1 %v334_v4, %s291_s20  ;;  %47 = vrot.lane.b32.xlu0 %v336_v5, %s291_s20 }
  0x1d   :  { %p270_p12 = pnand %p269_p11, %p263_p8 }
  0x20   :  { %53 = vrot.lane.b32.xlu1 %v340_v6, %s291_s20  ;;  %51 = vrot.lane.b32.xlu0 %v342_v7, %s291_s20 }
  0x24   :  { %65 = vrot.lane.b32.xlu1 %v330_v3, %s292_s0  ;;  %63 = vrot.lane.b32.xlu0 %v324_v1, %s292_s0 }
  0x28   :  { %69 = vrot.lane.b32.xlu1 %v328_v2, %s292_s0  ;;  %67 = vrot.lane.b32.xlu0 %v322_v0, %s292_s0 }
  0x2c   :  { %73 = vrot.lane.b32.xlu1 %v334_v4, %s292_s0  ;;  %71 = vrot.lane.b32.xlu0 %v336_v5, %s292_s0 }
  0x30   :  { %77 = vrot.lane.b32.xlu1 %v340_v6, %s292_s0  ;;  %75 = vrot.lane.b32.xlu0 %v342_v7, %s292_s0 }
  0x34   :  { %89 = vrot.lane.b32.xlu1 %v330_v3, %s293_s21  ;;  %87 = vrot.lane.b32.xlu0 %v324_v1, %s293_s21 }
  0x38   :  { %93 = vrot.lane.b32.xlu1 %v328_v2, %s293_s21  ;;  %91 = vrot.lane.b32.xlu0 %v322_v0, %s293_s21 }
  0x3c   :  { %97 = vrot.lane.b32.xlu1 %v334_v4, %s293_s21  ;;  %95 = vrot.lane.b32.xlu0 %v336_v5, %s293_s21 }
  0x40   :  { %101 = vrot.lane.b32.xlu1 %v340_v6, %s293_s21  ;;  %99 = vrot.lane.b32.xlu0 %v342_v7, %s293_s21 }
  0x44   :  { %113 = vrot.lane.b32.xlu1 %v330_v3, %s294_s22  ;;  %111 = vrot.lane.b32.xlu0 %v324_v1, %s294_s22 }
  0x48   :  { %117 = vrot.lane.b32.xlu1 %v328_v2, %s294_s22  ;;  %115 = vrot.lane.b32.xlu0 %v322_v0, %s294_s22 }
  0x4c   :  { %121 = vrot.lane.b32.xlu1 %v334_v4, %s294_s22  ;;  %119 = vrot.lane.b32.xlu0 %v336_v5, %s294_s22 }
  0x50   :  { %125 = vrot.lane.b32.xlu1 %v340_v6, %s294_s22  ;;  %123 = vrot.lane.b32.xlu0 %v342_v7, %s294_s22 }
  0x54   :  { %137 = vrot.lane.b32.xlu1 %v330_v3, %s295_s23  ;;  %135 = vrot.lane.b32.xlu0 %v324_v1, %s295_s23 }
  0x58   :  { %141 = vrot.lane.b32.xlu1 %v328_v2, %s295_s23  ;;  %139 = vrot.lane.b32.xlu0 %v322_v0, %s295_s23 }
  0x5c   :  { %145 = vrot.lane.b32.xlu1 %v334_v4, %s295_s23  ;;  %143 = vrot.lane.b32.xlu0 %v336_v5, %s295_s23 }
  0x60   :  { %149 = vrot.lane.b32.xlu1 %v340_v6, %s295_s23  ;;  %147 = vrot.lane.b32.xlu0 %v342_v7, %s295_s23 }
  0x86   :  { %v44_v8 = vpop.permute.xlu1 %43  ;;  %v40_v9 = vpop.permute.xlu0 %39 }
  0x87   :  { %v160_v40 = vsel %vm159_vm0, %v324_v1, %v40_v9  ;;  %v162_v50 = vsel %vm159_vm0, %v322_v0, %v44_v8 }
  0x8a   :  { %v46_v10 = vpop.permute.xlu1 %45  ;;  %v42_v11 = vpop.permute.xlu0 %41 }
  0x8b   :  { %v161_v41 = vsel %vm159_vm0, %v330_v3, %v42_v11  ;;  %v163_v51 = vsel %vm159_vm0, %v328_v2, %v46_v10 }
  0x8e   :  { %v50_v12 = vpop.permute.xlu1 %49  ;;  %v48_v13 = vpop.permute.xlu0 %47 }
  0x8f   :  { %v165_v62 = vsel %vm159_vm0, %v334_v4, %v50_v12  ;;  %v164_v63 = vsel %vm159_vm0, %v336_v5, %v48_v13 }
  0x92   :  { %v378_v14 = vpop.permute.xlu1 %53  ;;  %v380_v15 = vpop.permute.xlu0 %51 }
  0x93   :  { %v167_v12 = vsel %vm159_vm0, %v340_v6, %v378_v14  ;;  %v166_v13 = vsel %vm159_vm0, %v342_v7, %v380_v15 }
  0x96   :  { %v66_v16 = vpop.permute.xlu1 %65  ;;  %v64_v17 = vpop.permute.xlu0 %63 }
  0x97   :  { %v170_v42 = vsel %vm168_vm1, %v161_v41, %v66_v16  ;;  %v169_v43 = vsel %vm168_vm1, %v160_v40, %v64_v17 }
  0x9a   :  { %v70_v18 = vpop.permute.xlu1 %69  ;;  %v68_v19 = vpop.permute.xlu0 %67 }
  0x9b   :  { %v172_v54 = vsel %vm168_vm1, %v163_v51, %v70_v18  ;;  %v171_v55 = vsel %vm168_vm1, %v162_v50, %v68_v19 }
  0x9e   :  { %v74_v20 = vpop.permute.xlu1 %73  ;;  %v72_v21 = vpop.permute.xlu0 %71 }
  0x9f   :  { %v174_v2 = vsel %vm168_vm1, %v165_v62, %v74_v20  ;;  %v173_v3 = vsel %vm168_vm1, %v164_v63, %v72_v21 }
  0xa2   :  { %v382_v22 = vpop.permute.xlu1 %77  ;;  %v384_v23 = vpop.permute.xlu0 %75 }
  0xa3   :  { %v176_v18 = vsel %vm168_vm1, %v167_v12, %v382_v22  ;;  %v175_v19 = vsel %vm168_vm1, %v166_v13, %v384_v23 }
  0xa6   :  { %v90_v24 = vpop.permute.xlu1 %89  ;;  %v88_v25 = vpop.permute.xlu0 %87 }
  0xa7   :  { %v179_v44 = vsel %vm177_vm2, %v170_v42, %v90_v24  ;;  %v178_v45 = vsel %vm177_vm2, %v169_v43, %v88_v25 }
  0xaa   :  { %v94_v26 = vpop.permute.xlu1 %93  ;;  %v92_v27 = vpop.permute.xlu0 %91 }
  0xab   :  { %v181_v56 = vsel %vm177_vm2, %v172_v54, %v94_v26  ;;  %v180_v57 = vsel %vm177_vm2, %v171_v55, %v92_v27 }
  0xae   :  { %v98_v28 = vpop.permute.xlu1 %97  ;;  %v96_v29 = vpop.permute.xlu0 %95 }
  0xaf   :  { %v183_v8 = vsel %vm177_vm2, %v174_v2, %v98_v28  ;;  %v182_v9 = vsel %vm177_vm2, %v173_v3, %v96_v29 }
  0xb2   :  { %v386_v30 = vpop.permute.xlu1 %101  ;;  %v388_v31 = vpop.permute.xlu0 %99 }
  0xb3   :  { %v185_v6 = vsel %vm177_vm2, %v176_v18, %v386_v30  ;;  %v184_v7 = vsel %vm177_vm2, %v175_v19, %v388_v31 }
  0xb6   :  { %v114_v32 = vpop.permute.xlu1 %113  ;;  %v112_v33 = vpop.permute.xlu0 %111 }
  0xb7   :  { %v188_v46 = vsel %vm186_vm3, %v179_v44, %v114_v32  ;;  %v187_v47 = vsel %vm186_vm3, %v178_v45, %v112_v33 }
  0xba   :  { %v118_v34 = vpop.permute.xlu1 %117  ;;  %v116_v35 = vpop.permute.xlu0 %115 }
  0xbb   :  { %v190_v58 = vsel %vm186_vm3, %v181_v56, %v118_v34  ;;  %v189_v59 = vsel %vm186_vm3, %v180_v57, %v116_v35 }
  0xbe   :  { %v122_v36 = vpop.permute.xlu1 %121  ;;  %v120_v37 = vpop.permute.xlu0 %119 }
  0xbf   :  { %v192_v4 = vsel %vm186_vm3, %v183_v8, %v122_v36  ;;  %v191_v5 = vsel %vm186_vm3, %v182_v9, %v120_v37 }
  0xc2   :  { %v126_v38 = vpop.permute.xlu1 %125  ;;  %v124_v39 = vpop.permute.xlu0 %123 }
  0xc3   :  { %v194_v14 = vsel %vm186_vm3, %v185_v6, %v126_v38  ;;  %v193_v15 = vsel %vm186_vm3, %v184_v7, %v124_v39 }
  0xc6   :  { %v138_v48 = vpop.permute.xlu1 %137  ;;  %v136_v49 = vpop.permute.xlu0 %135 }
  0xc7   :  { %v197_v52 = vsel %vm195_vm4, %v188_v46, %v138_v48  ;;  %v196_v53 = vsel %vm195_vm4, %v187_v47, %v136_v49 }
  0xc8   :  { %206 = vst.msk [vmem:[#allocation5 + $0x8] sm:$0xff] %vm204_vm5, %v197_v52  ;;  %205 = vst.msk [vmem:[#allocation5] sm:$0xff] %vm204_vm5, %v196_v53 }
  0xca   :  { %v142_v60 = vpop.permute.xlu1 %141  ;;  %v140_v61 = vpop.permute.xlu0 %139 }
  0xcb   :  { %v199_v0 = vsel %vm195_vm4, %v190_v58, %v142_v60  ;;  %v198_v1 = vsel %vm195_vm4, %v189_v59, %v140_v61 }
  0xcc   :  { %208 = vst.msk [vmem:[#allocation5 + $0x18] sm:$0xff] %vm204_vm5, %v199_v0  ;;  %207 = vst.msk [vmem:[#allocation5 + $0x10] sm:$0xff] %vm204_vm5, %v198_v1 }
  0xce   :  { %v146_v10 = vpop.permute.xlu1 %145  ;;  %v144_v11 = vpop.permute.xlu0 %143 }
  0xcf   :  { %v201_v16 = vsel %vm195_vm4, %v192_v4, %v146_v10  ;;  %v200_v17 = vsel %vm195_vm4, %v191_v5, %v144_v11 }
  0xd0   :  { %210 = vst.msk [vmem:[#allocation5 + $0x28] sm:$0xff] %vm204_vm5, %v201_v16  ;;  %209 = vst.msk [vmem:[#allocation5 + $0x20] sm:$0xff] %vm204_vm5, %v200_v17 }
  0xd2   :  { %v150_v20 = vpop.permute.xlu1 %149  ;;  %v148_v21 = vpop.permute.xlu0 %147 }
  0xd3   :  { %v203_v22 = vsel %vm195_vm4, %v194_v14, %v150_v20  ;;  %v202_v23 = vsel %vm195_vm4, %v193_v15, %v148_v21 }
  0xd4   :  { %213 = vst.msk [vmem:[#allocation5 + $0x38] sm:$0xf] %vm212_vm6, %v203_v22 }
  0xd5   :  { %211 = vst.msk [vmem:[#allocation5 + $0x30] sm:$0xff] %vm204_vm5, %v202_v23 }
  0xd6   :  { %273 = shalt.err (!%p270_p12)
}
  0xd7   :  { %s274_s29 = scalar_lea.hbm %s467_s1, 1024 }
  0xd8   :  { %p275_p13 = scmp.ne.s32.totalorder %s467_s1, %s274_s29  ;;  %p278_p0 = scmp.lt.u32.totalorder %s274_s29, %s467_s1 }
  0xda   :  { %p280_p1 = pnand %p278_p0, %p275_p13 }
  0xdc   :  { %283 = shalt.err (!%p280_p1)
}
  0xdd   :  { %225 = dma.vmem_to_hbm [thread:$0]  %s220_s25, 1024, %s467_s1, [#allocation4], %s289_s16, %s289_s16, %s290_s17  }
  0xde   :  { %286 = dma.done.wait [#allocation4], 1024  }
  0xdf   :  { %287 = vsyncadd [#allocation4], 4294966272 }
  0xe0   :  { %229 = vsyncpa [#allocation3], 1 }
  0xe1   :  { %230 = vsyncpa [#allocation4], 1 }

</bundles_post_ra>
